<compile_context>
chip_gen: v7x
topology: tpu7x:2x2x1
jax: 0.10.0
libtpu: 0.0.40
codegen_flags: <defaults>
</compile_context>

<pallas_src>
import functools

import jax
import jax.numpy as jnp
from jax.experimental import pallas as pl
from jax.experimental.pallas import tpu as pltpu


def _projection_head_kernel(x_ref, w1_ref, s1_ref, w2_ref, b2_ref, o_ref):
    """One (C, tile_hw) slab of pixels -> (P, tile_hw) L2-normalized projections."""
    x = x_ref[0]                                              # (C, tile_hw)

    # Conv1 with BN/bias folded in:  h = relu(W1f @ x + s1)    (MXU + VPU)
    h = jnp.dot(w1_ref[...], x, preferred_element_type=jnp.float32)
    h = jnp.maximum(h + s1_ref[...], 0.0)                      # (C, tile_hw)

    # Conv2:  y = W2 @ h + b2                                  (MXU)
    y = jnp.dot(w2_ref[...], h.astype(w2_ref.dtype),
                preferred_element_type=jnp.float32) + b2_ref[...]   # (P, tile_hw)

    # F.normalize(p=2, dim=channel): y / max(||y||_2, 1e-12) per pixel column.
    # Clamping the squared norm at 1e-24 == clamping the norm at 1e-12.
    ss = jnp.sum(y * y, axis=0, keepdims=True)                 # (1, tile_hw)
    inv = jax.lax.rsqrt(jnp.maximum(ss, 1e-24))                # EUP
    o_ref[0] = (y * inv).astype(o_ref.dtype)


def projection_head_forward(x_nchw, folded_params, *, tile_hw=512,
                            compute_dtype=jnp.float32):
    """NCHW in / NCHW out, matching the PyTorch module (no layout transposes)."""
    w1f, s1, w2, b2 = folded_params
    n, c, hgt, wid = x_nchw.shape
    p = w2.shape[0]
    hw = hgt * wid
    x = x_nchw.reshape(n, c, hw)                 # free (contiguous view)

    if compute_dtype != jnp.float32:
        # bf16 streaming path: matmul operands bf16, accumulate/normalize f32.
        x = x.astype(compute_dtype)
        w1f = w1f.astype(compute_dtype)
        w2 = w2.astype(compute_dtype)

    # Pixel tile: either the full HW extent or a multiple of 128 lanes.
    if hw <= tile_hw:
        tile = hw
    else:
        tile = max(128, (tile_hw // 128) * 128)
    grid = (n, pl.cdiv(hw, tile))

    full = lambda i, j: (0, 0)                   # grid-invariant weight blocks

    cost = pl.CostEstimate(
        flops=2 * n * hw * (c * c + c * p),
        transcendentals=n * hw,                  # one rsqrt per pixel
        bytes_accessed=4 * (n * hw * c + n * hw * p
                            + c * c + c * p + c + p),
    )

    out = pl.pallas_call(
        _projection_head_kernel,
        out_shape=jax.ShapeDtypeStruct((n, p, hw), jnp.float32),
        grid_spec=pltpu.PrefetchScalarGridSpec(
            num_scalar_prefetch=0,
            grid=grid,
            in_specs=[
                pl.BlockSpec((1, c, tile), lambda i, j: (i, 0, j)),   # x slab
                pl.BlockSpec((c, c), full),                            # W1 (BN folded)
                pl.BlockSpec((c, 1), full),                            # s1
                pl.BlockSpec((p, c), full),                            # W2
                pl.BlockSpec((p, 1), full),                            # b2
            ],
            out_specs=pl.BlockSpec((1, p, tile), lambda i, j: (i, 0, j)),
        ),
        compiler_params=pltpu.CompilerParams(
            dimension_semantics=("parallel", "parallel")),
        cost_estimate=cost,
    )(x, w1f, s1, w2, b2)

    return out.reshape(n, p, hgt, wid)


def make_raw_params(key, dim_in, proj_dim):
    """Synthetic parameters mirroring the PyTorch module (convmlp, eval-mode BN).

    Conv weights kept in PyTorch (out, in) layout; the kernel computes W @ x."""
    k = jax.random.split(key, 8)
    w1 = jax.random.normal(k[0], (dim_in, dim_in), jnp.float32) * 0.1
    b1 = jax.random.normal(k[1], (dim_in,), jnp.float32) * 0.1
    gamma = 1.0 + 0.1 * jax.random.normal(k[2], (dim_in,), jnp.float32)
    beta = 0.1 * jax.random.normal(k[3], (dim_in,), jnp.float32)
    running_mean = 0.05 * jax.random.normal(k[4], (dim_in,), jnp.float32)
    running_var = 1.0 + 0.1 * jax.random.uniform(k[5], (dim_in,), jnp.float32)
    w2 = jax.random.normal(k[6], (proj_dim, dim_in), jnp.float32) * 0.1
    b2 = jax.random.normal(k[7], (proj_dim,), jnp.float32) * 0.1
    eps = 1e-5
    return (w1, b1, gamma, beta, running_mean, running_var, eps, w2, b2)


def fold_params(raw):
    """Fold eval-mode BN and the conv1 bias into (W1f, s1, W2, b2)."""
    w1, b1, gamma, beta, mean, var, eps, w2, b2 = raw
    scale = gamma / jnp.sqrt(var + eps)          # (C,) per-output-channel scale
    shift = beta - mean * scale                  # (C,)
    w1f = w1 * scale[:, None]                    # scale row `o` of W1 by scale[o]
    s1 = (b1 * scale + shift)[:, None]           # (C, 1)
    return (w1f, s1, w2, b2[:, None])


def _reference(x_nchw, raw):
    """Pure-JAX reference of the unfolded PyTorch forward (eval-mode BN)."""
    w1, b1, gamma, beta, mean, var, eps, w2, b2 = raw
    n, c, hgt, wid = x_nchw.shape
    x = x_nchw.reshape(n, c, hgt * wid)
    hid = jnp.einsum('oi,nis->nos', w1, x) + b1[None, :, None]
    hid = ((hid - mean[None, :, None]) / jnp.sqrt(var[None, :, None] + eps)
           * gamma[None, :, None] + beta[None, :, None])
    hid = jnp.maximum(hid, 0.0)
    y = jnp.einsum('oi,nis->nos', w2, hid) + b2[None, :, None]
    nrm = jnp.maximum(jnp.sqrt(jnp.sum(y * y, axis=1, keepdims=True)), 1e-12)
    return (y / nrm).reshape(n, -1, hgt, wid)


if __name__ == "__main__":
    key = jax.random.PRNGKey(0)
    kx, kp = jax.random.split(key)

    # Small but multi-tile: HW = 32*32 = 1024 pixels -> 2 pixel tiles per batch
    # at tile_hw=512; grid = (2, 2).
    N, dim_in, H, W = 2, 16, 32, 32
    proj_dim = 32

    x = jax.random.normal(kx, (N, dim_in, H, W), jnp.float32)
    raw = make_raw_params(kp, dim_in, proj_dim)
    params = fold_params(raw)

    fwd = jax.jit(functools.partial(projection_head_forward, tile_hw=512))
    out = jax.block_until_ready(fwd(x, params))

    ref = _reference(x, raw)
    assert out.shape == (N, proj_dim, H, W)
    assert jnp.allclose(out, ref, atol=1e-4, rtol=1e-4), "mismatch vs reference"

    print("KERNEL_OK")
</pallas_src>

<mosaic_0001>
module attributes {stable_mosaic.version = 11 : i64} {
  func.func @_projection_head_kernel(%arg0: i32, %arg1: i32, %arg2: memref<1x16x512xf32, #tpu.memory_space<vmem>>, %arg3: memref<16x16xf32, #tpu.memory_space<vmem>>, %arg4: memref<16x1xf32, #tpu.memory_space<vmem>>, %arg5: memref<32x16xf32, #tpu.memory_space<vmem>>, %arg6: memref<32x1xf32, #tpu.memory_space<vmem>>, %arg7: memref<1x32x512xf32, #tpu.memory_space<vmem>>) attributes {dimension_semantics = [#tpu.dimension_semantics<parallel>, #tpu.dimension_semantics<parallel>], iteration_bounds = array<i64: 2, 2>, scalar_prefetch = 0 : i64, scratch_operands = 0 : i64, tpu.core_type = #tpu.core_type<tc>, window_params = [{transform_indices = @transform_0, window_bounds = array<i64: 1, 16, 512>}, {pipeline_mode = #tpu.pipeline_mode<synchronous>, transform_indices = @transform_1, window_bounds = array<i64: 16, 16>}, {pipeline_mode = #tpu.pipeline_mode<synchronous>, transform_indices = @transform_2, window_bounds = array<i64: 16, 1>}, {pipeline_mode = #tpu.pipeline_mode<synchronous>, transform_indices = @transform_3, window_bounds = array<i64: 32, 16>}, {pipeline_mode = #tpu.pipeline_mode<synchronous>, transform_indices = @transform_4, window_bounds = array<i64: 32, 1>}, {transform_indices = @transform_5, window_bounds = array<i64: 1, 32, 512>}]} {
    %c0 = arith.constant 0 : index
    %c0_0 = arith.constant 0 : index
    %c0_1 = arith.constant 0 : index
    %0 = vector.load %arg2[%c0, %c0_0, %c0_1] : memref<1x16x512xf32, #tpu.memory_space<vmem>>, vector<1x16x512xf32>
    %1 = vector.shape_cast %0 : vector<1x16x512xf32> to vector<16x512xf32>
    %c0_2 = arith.constant 0 : index
    %c0_3 = arith.constant 0 : index
    %2 = vector.load %arg3[%c0_2, %c0_3] : memref<16x16xf32, #tpu.memory_space<vmem>>, vector<16x16xf32>
    %cst = arith.constant dense<0.000000e+00> : vector<16x512xf32>
    %3 = tpu.matmul %2, %1, %cst {dimension_numbers = #tpu.dot_dimension_numbers<[1], [0], [0], [1], [0, 0, 1, 1], [], []>} : vector<16x16xf32>, vector<16x512xf32>, vector<16x512xf32> -> vector<16x512xf32>
    %c0_4 = arith.constant 0 : index
    %c0_5 = arith.constant 0 : index
    %4 = vector.load %arg4[%c0_4, %c0_5] : memref<16x1xf32, #tpu.memory_space<vmem>>, vector<16x1xf32>
    %5 = vector.broadcast %4 : vector<16x1xf32> to vector<16x512xf32>
    %6 = arith.addf %3, %5 : vector<16x512xf32>
    %cst_6 = arith.constant 0.000000e+00 : f32
    %7 = vector.broadcast %cst_6 : f32 to vector<16x512xf32>
    %8 = arith.maximumf %6, %7 : vector<16x512xf32>
    %c0_7 = arith.constant 0 : index
    %c0_8 = arith.constant 0 : index
    %9 = vector.load %arg5[%c0_7, %c0_8] : memref<32x16xf32, #tpu.memory_space<vmem>>, vector<32x16xf32>
    %cst_9 = arith.constant dense<0.000000e+00> : vector<32x512xf32>
    %10 = tpu.matmul %9, %8, %cst_9 {dimension_numbers = #tpu.dot_dimension_numbers<[1], [0], [0], [1], [0, 0, 1, 1], [], []>} : vector<32x16xf32>, vector<16x512xf32>, vector<32x512xf32> -> vector<32x512xf32>
    %c0_10 = arith.constant 0 : index
    %c0_11 = arith.constant 0 : index
    %11 = vector.load %arg6[%c0_10, %c0_11] : memref<32x1xf32, #tpu.memory_space<vmem>>, vector<32x1xf32>
    %12 = vector.broadcast %11 : vector<32x1xf32> to vector<32x512xf32>
    %13 = arith.addf %10, %12 : vector<32x512xf32>
    %14 = arith.mulf %13, %13 : vector<32x512xf32>
    %cst_12 = arith.constant dense<0.000000e+00> : vector<512xf32>
    %15 = vector.multi_reduction <add>, %14, %cst_12 [0] : vector<32x512xf32> to vector<512xf32>
    %16 = vector.shape_cast %15 : vector<512xf32> to vector<1x512xf32>
    %cst_13 = arith.constant 1.000000e-24 : f32
    %17 = vector.broadcast %cst_13 : f32 to vector<1x512xf32>
    %18 = arith.maximumf %16, %17 : vector<1x512xf32>
    %19 = math.rsqrt %18 : vector<1x512xf32>
    %20 = vector.broadcast %19 : vector<1x512xf32> to vector<32x512xf32>
    %21 = arith.mulf %13, %20 : vector<32x512xf32>
    %c0_14 = arith.constant 0 : index
    %c0_15 = arith.constant 0 : index
    %c0_16 = arith.constant 0 : index
    %22 = vector.load %arg7[%c0_14, %c0_15, %c0_16] : memref<1x32x512xf32, #tpu.memory_space<vmem>>, vector<1x32x512xf32>
    %23 = vector.shape_cast %22 : vector<1x32x512xf32> to vector<32x512xf32>
    %24 = vector.shape_cast %21 : vector<32x512xf32> to vector<1x32x512xf32>
    tpu.vector_store %arg7[%c0_14, %c0_15, %c0_16], %24 {strides = array<i32>} : memref<1x32x512xf32, #tpu.memory_space<vmem>>, vector<1x32x512xf32>,
    return
  }
  func.func @transform_0(%arg0: i32, %arg1: i32) -> (i32, i32, i32) {
    %c0_i32 = arith.constant 0 : i32
    %c0_i32_0 = arith.constant 0 : i32
    return %arg0, %c0_i32, %arg1 : i32, i32, i32
  }
  func.func @transform_1(%arg0: i32, %arg1: i32) -> (i32, i32) {
    %c0_i32 = arith.constant 0 : i32
    %c0_i32_0 = arith.constant 0 : i32
    %c0_i32_1 = arith.constant 0 : i32
    return %c0_i32, %c0_i32_0 : i32, i32
  }
  func.func @transform_2(%arg0: i32, %arg1: i32) -> (i32, i32) {
    %c0_i32 = arith.constant 0 : i32
    %c0_i32_0 = arith.constant 0 : i32
    %c0_i32_1 = arith.constant 0 : i32
    return %c0_i32, %c0_i32_0 : i32, i32
  }
  func.func @transform_3(%arg0: i32, %arg1: i32) -> (i32, i32) {
    %c0_i32 = arith.constant 0 : i32
    %c0_i32_0 = arith.constant 0 : i32
    %c0_i32_1 = arith.constant 0 : i32
    return %c0_i32, %c0_i32_0 : i32, i32
  }
  func.func @transform_4(%arg0: i32, %arg1: i32) -> (i32, i32) {
    %c0_i32 = arith.constant 0 : i32
    %c0_i32_0 = arith.constant 0 : i32
    %c0_i32_1 = arith.constant 0 : i32
    return %c0_i32, %c0_i32_0 : i32, i32
  }
  func.func @transform_5(%arg0: i32, %arg1: i32) -> (i32, i32, i32) {
    %c0_i32 = arith.constant 0 : i32
    %c0_i32_0 = arith.constant 0 : i32
    return %arg0, %c0_i32, %arg1 : i32, i32, i32
  }
}

</mosaic_0001>

<bundles_post_ra>
// kernel: projection_head_forward.1
= control target key start
LH: loop header
LB: loop body
LE: loop exit
PB: predicated region body
PF: predicated region fallthrough
CT: control target
= control target key end

     0   :  { %s1108_s18 = smov 0   ;;  %s1110_s19 = smov 0   ;;  %s1372_s0 = inlined_call_operand.vmem [shape: f32[2,16,1024], index: 0, kind: input, shape index: {}]   ;;  %s1373_s1 = inlined_call_operand.vmem [shape: f32[16,16], index: 1, kind: input, shape index: {}]   ;;  %s1374_s2 = inlined_call_operand.vmem [shape: f32[16,1], index: 2, kind: input, shape index: {}]   ;;  %s1375_s3 = inlined_call_operand.vmem [shape: f32[32,16], index: 3, kind: input, shape index: {}]   ;;  %s1376_s4 = inlined_call_operand.vmem [shape: f32[32,1], index: 4, kind: input, shape index: {}]   ;;  %s1377_s5 = inlined_call_operand.vmem [shape: f32[2,32,1024], index: 5, kind: output, shape index: {}]  }
   0x1   :  { %s1112_s20 = smov 0   ;;  %s1114_s21 = smov 0  }
   0x2   :  { %s1116_s22 = smov 0   ;;  %s1118_s23 = smov 0  }
   0x3   :  { %s1120_s24 = smov 0  }
   0x4 LB: > { %s24_s25 = sadd.s32 1, %s1066_s22  ;;  %s27_s26 = sadd.s32 1, %s1070_s23  ;;  %s1074_s24 = sphi %s1120_s24, %s15_s24   ;;  %s1070_s23 = sphi %s1118_s23, %s1384_s23   ;;  %s1066_s22 = sphi %s1116_s22, %s1383_s22   ;;  %s1062_s21 = sphi %s1114_s21, %s1382_s21   ;;  %s1058_s20 = sphi %s1112_s20, %s1381_s20   ;;  %s1054_s19 = sphi %s1110_s19, %s1380_s19   ;;  %s1050_s18 = sphi %s1108_s18, %s1379_s18  }
   0x5   : > { %p25_p0 = scmp.ge.s32.totalorder %s24_s25, 2  ;;  %s907_s27 = sadd.s32 4294967295, %s1074_s24  }
   0x6   : > { %p43_p1 = scmp.ne.s32.totalorder %s1054_s19, %s1050_s18  ;;  %p44_p2 = scmp.eq.s32.totalorder %s1074_s24, 0 }
   0x7   : > { %s1386_s25 = smov (%p25_p0, %s24_s25), 0  ;;  %s1388_s26 = smov (!%p25_p0, %s27_s26), %s1070_s23 }
   0x8   : > { %p29_p3 = scmp.ge.s32.totalorder %s1388_s26, 2  ;;  %p159_p4 = scmp.eq.s32.totalorder %s907_s27, 3 }
   0x9   : > { %s32_s28 = ssub.s32 %s1066_s22, %s1386_s25  ;;  %p45_p5 = por %p44_p2, %p43_p1 }
   0xa   : > { %s1390_s26 = smov (%p29_p3, %s1388_s26), 0  ;;  %p1156_p6 = por %p159_p4, %p43_p1 }
   0xb   : > { %s31_s30 = ssub.s32 %s1070_s23, %s1390_s26  ;;  %s36_s7 = sadd.s32 1, %s1054_s19 }
   0xc   : > { %s33_s6 = sor.u32 %s32_s28, %s31_s30  ;;  %p910_p8 = scmp.ge.s32.totalorder %s1074_s24, 4 }
   0xd   : > { %p34_p7 = scmp.eq.s32.totalorder %s33_s6, 0 }
   0xe   : > { %193 = sbr.rel (%p910_p8) target bundleno = 32 (0x20), region = 32 }
   0xf   : > { %s1164_s8 = scalar_select %p34_p7, %s1054_s19, %s36_s7  }
  0x15   : > { %196 = sbr.rel (!%p45_p5) target bundleno = 32 (0x20), region = 36  ;;  %s198_s9 = sand.u32 (%p45_p5), 1, %s1054_s19  }
  0x16   : > { %s912_s10 = sshll.u32 (%p45_p5), %s1066_s22, 2  ;;  %s911_s11 = sshll.u32 (%p45_p5), %s198_s9, 6 }
  0x17   : > { %s913_s12 = sshll.u32 (%p45_p5), %s1070_s23, 4  ;;  %s200_s27 = scalar_lea.vmem (%p45_p5), [#allocation2], %s911_s11 }
  0x18   : > { %s203_s13 = sadd.s32 (%p45_p5), %s913_s12, %s912_s10 }
  0x19   : > { %s914_s14 = sshll.u32 (%p45_p5), %s203_s13, 3 }
  0x1a   : > { %s205_s17 = scalar_lea.vmem (%p45_p5), %s1372_s0, %s914_s14 }
  0x1b   : > { %v218_v0 = vld [vmem:[%s205_s17] sm:$0xff] (%p45_p5)  ;;  %v220_v1 = vld [vmem:[%s205_s17 + $0x8] sm:$0xff] (%p45_p5)  ;;  %v222_v2 = vld [vmem:[%s205_s17 + $0x10] sm:$0xff] (%p45_p5) }
  0x1c   : > { %219 = vst [vmem:[%s200_s27] sm:$0xff] %v218_v0  ;;  %221 = vst [vmem:[%s200_s27 + $0x8] sm:$0xff] %v220_v1  ;;  %v224_v3 = vld [vmem:[%s205_s17 + $0x18] sm:$0xff]  ;;  %v226_v4 = vld [vmem:[%s205_s17 + $0x40] sm:$0xff] }
  0x1d   : > { %223 = vst [vmem:[%s200_s27 + $0x10] sm:$0xff] %v222_v2  ;;  %v228_v5 = vld [vmem:[%s205_s17 + $0x48] sm:$0xff]  ;;  %225 = vst [vmem:[%s200_s27 + $0x18] sm:$0xff] %v224_v3  ;;  %v230_v6 = vld [vmem:[%s205_s17 + $0x50] sm:$0xff] }
  0x1e   : > { %227 = vst [vmem:[%s200_s27 + $0x20] sm:$0xff] %v226_v4  ;;  %229 = vst [vmem:[%s200_s27 + $0x28] sm:$0xff] %v228_v5  ;;  %v232_v7 = vld [vmem:[%s205_s17 + $0x58] sm:$0xff] }
  0x1f   : > { %231 = vst [vmem:[%s200_s27 + $0x30] sm:$0xff] %v230_v6  ;;  %233 = vst [vmem:[%s200_s27 + $0x38] sm:$0xff] %v232_v7 }
  0x20 PF: > { %p915_p9 = scmp.ge.s32.totalorder %s1074_s24, 1  ;;  %p238_p10 = scmp.lt.s32.totalorder %s1074_s24, 5 }
  0x22   : > { %p239_p11 = pnand %p915_p9, %p238_p10 }
  0x23   : > { %s245_s28 = sand.u32 (!%p239_p11), 1, %s1050_s18   ;;  %v1076_v8 = vmov (!%p239_p11), 0.0   ;;  %v283_v9 = vld [vmem:[%s1374_s2] sm:$0xff] (!%p239_p11)  ;;  %v1077_v10 = vmov (!%p239_p11), 0   ;;  %v284_v22 = vld [vmem:[%s1374_s2 + $0x8] sm:$0xff] (!%p239_p11)  ;;  %vm295_vm0 = vcmask (!%p239_p11), 130048  }
  0x24   : > { %242 = sbr.rel (%p239_p11) target bundleno = 548 (0x224), region = 59  ;;  %s916_s30 = sshll.u32 (!%p239_p11), %s245_s28, 6  ;;  %366 = vmatprep.mubr.f32.mxu0 (!%p239_p11), %v1076_v8  ;;  %443 = vmatprep.mubr.f32.mxu1 (!%p239_p11), %v1076_v8  ;;  %v281_v24 = vld [vmem:[%s1373_s1] sm:$0xff] (!%p239_p11)  ;;  %v470_v25 = vld [vmem:[%s1376_s4 + $0x10] sm:$0xff] (!%p239_p11)  ;;  %v282_v26 = vld [vmem:[%s1373_s1 + $0x8] sm:$0xff] (!%p239_p11) }
  0x25   : > { %1010 = vset.pattern.permute.xlu0 (!%p239_p11), %v1077_v10  ;;  %1011 = vset.pattern.permute.xlu1 (!%p239_p11), %v1077_v10  ;;  %s247_s9 = scalar_lea.vmem (!%p239_p11), [#allocation2], %s916_s30  ;;  %v468_v27 = vld [vmem:[%s1376_s4] sm:$0xff] (!%p239_p11)  ;;  %v469_v28 = vld [vmem:[%s1376_s4 + $0x8] sm:$0xff] (!%p239_p11)  ;;  %v471_v29 = vld [vmem:[%s1376_s4 + $0x18] sm:$0xff] (!%p239_p11)  ;;  %s917_s30 = sshll.u32 (!%p239_p11), %s245_s28, 7 }
  0x26   : > { %v274_v11 = vld [vmem:[%s247_s9 + $0x8] sm:$0xff] (!%p239_p11)  ;;  %v276_v13 = vld [vmem:[%s247_s9 + $0x18] sm:$0xff] (!%p239_p11)  ;;  %287 = vperm.xlu0 (!%p239_p11), %1010, %v283_v9   ;;  %v273_v16 = vld [vmem:[%s247_s9] sm:$0xff] (!%p239_p11)  ;;  %474 = vperm.xlu1 (!%p239_p11), %1011, %v468_v27   ;;  %s1302_s18 = scalar_lea.vmem (!%p239_p11), [#allocation3], %s917_s30 }
  0x27   : > { %v278_v12 = vld [vmem:[%s247_s9 + $0x28] sm:$0xff] (!%p239_p11)  ;;  %v280_v15 = vld [vmem:[%s247_s9 + $0x38] sm:$0xff] (!%p239_p11)  ;;  %v277_v17 = vld [vmem:[%s247_s9 + $0x20] sm:$0xff] (!%p239_p11) }
  0x28   : > { %v936_v14 = vpack.c.bf16 (!%p239_p11), %v278_v12, %v274_v11  ;;  %v940_v18 = vpack.c.bf16 (!%p239_p11), %v280_v15, %v276_v13  ;;  %v938_v19 = vpack.c.bf16 (!%p239_p11), %v277_v17, %v273_v16  ;;  %v275_v20 = vld [vmem:[%s247_s9 + $0x10] sm:$0xff] (!%p239_p11)  ;;  %v464_v60 = vld [vmem:[%s1375_s3] sm:$0xff] (!%p239_p11)  ;;  %v465_v61 = vld [vmem:[%s1375_s3 + $0x8] sm:$0xff] (!%p239_p11) }
  0x29   : > { %v279_v21 = vld [vmem:[%s247_s9 + $0x30] sm:$0xff] (!%p239_p11)  ;;  %v467_v63 = vld [vmem:[%s1375_s3 + $0x18] sm:$0xff] (!%p239_p11) }
  0x2a   : > { %937 = vmatprep.subr.bf16.mxu0 (!%p239_p11), %v936_v14  ;;  %v942_v23 = vpack.c.bf16 (!%p239_p11), %v279_v21, %v275_v20  ;;  %941 = vmatprep.subr.bf16.mxu1 (!%p239_p11), %v940_v18  ;;  %v466_v62 = vld [vmem:[%s1375_s3 + $0x10] sm:$0xff] (!%p239_p11) }
  0x2b   : > { %939 = vmatpush1.bf16.msra.mxu0 %v938_v19  ;;  %292 = vperm.xlu0 %1010, %v284_v22   ;;  %s931_s28 = sshll.u32 (%p1156_p6), %s1058_s20, 2  ;;  %s932_s6 = sshll.u32 (%p1156_p6), %s1062_s21, 5 }
  0x2c   : > { %943 = vmatpush1.bf16.msra.mxu1 %v942_v23  ;;  %479 = vperm.xlu1 %1011, %v469_v28   ;;  %s783_s29 = sadd.s32 (%p1156_p6), %s932_s6, %s931_s28 }
  0x2d   : > { %s933_s7 = sshll.u32 (%p1156_p6), %s783_s29, 3 }
  0x2e   : > { %918 = vmatmul.mubr.msk.f32.vlgmr.msra.gmra.mrb[0].mxu0 %vm295_vm0, %v281_v24  ;;  %s785_s11 = scalar_lea.vmem (%p1156_p6), %s1377_s5, %s933_s7 }
  0x2f   : > { %920 = vmatmul.mubr.msk.f32.vlgmr.msra.gmra.mrb[0].mxu1 %vm295_vm0, %v281_v24  ;;  %372 = vmatprep.mubr.f32.mxu0 %v1076_v8 }
  0x30   : > { %449 = vmatprep.mubr.f32.mxu1 %v1076_v8  ;;  %484 = vperm.xlu0 %1010, %v470_v25  }
  0x31   : > { %489 = vperm.xlu1 %1011, %v471_v29  }
  0x32   : > { %919 = vmatmul.mubr.msk.f32.gmra.mrb[2].mxu0 %vm295_vm0, %v282_v26 }
  0x33   : > { %921 = vmatmul.mubr.msk.f32.gmra.mrb[2].mxu1 %vm295_vm0, %v282_v26  ;;  %568 = vmatprep.mubr.f32.mxu0 %v1076_v8 }
  0x34   : > { %657 = vmatprep.mubr.f32.mxu1 %v1076_v8 }
  0xa5   : > { %v288_v30 = vpop.permute.xlu0 %287  ;;  %v475_v0 = vpop.permute.xlu1 %474 }
  0xaa   : > { %v293_v36 = vpop.permute.xlu0 %292 }
  0xab   : > { %v480_v10 = vpop.permute.xlu1 %479 }
  0xaf   : > { %v485_v20 = vpop.permute.xlu0 %484 }
 0x101   : > { %v368_v31 = vpop.f32.mrb[0].mxu0 }
 0x102   : > { %v445_v32 = vpop.f32.mrb[0].mxu1  ;;  %v370_v33 = vpop.f32.mrb[1].mxu0  ;;  %v369_v35 = vadd.f32 %v368_v31, %v288_v30 }
 0x103   : > { %v447_v34 = vpop.f32.mrb[1].mxu1  ;;  %v446_v37 = vadd.f32 %v445_v32, %v288_v30  ;;  %v371_v38 = vadd.f32 %v370_v33, %v288_v30 }
 0x104   : > { %v448_v40 = vadd.f32 %v447_v34, %v288_v30  ;;  %v456_v47 = vmax.f32 %v369_v35, 0.0 }
 0x105   : > { %v374_v39 = vpop.f32.mrb[2].mxu0  ;;  %v458_v50 = vmax.f32 %v446_v37, 0.0  ;;  %v457_v51 = vmax.f32 %v371_v38, 0.0 }
 0x106   : > { %v375_v41 = vadd.f32 %v374_v39, %v293_v36  ;;  %v451_v42 = vpop.f32.mrb[2].mxu1  ;;  %v376_v43 = vpop.f32.mrb[3].mxu0  ;;  %v459_v54 = vmax.f32 %v448_v40, 0.0 }
 0x107   : > { %v452_v44 = vadd.f32 %v451_v42, %v293_v36  ;;  %v377_v45 = vadd.f32 %v376_v43, %v293_v36  ;;  %v453_v46 = vpop.f32.mrb[3].mxu1  ;;  %v490_v42 = vpop.permute.xlu1 %489 }
 0x108   : > { %v460_v48 = vmax.f32 %v375_v41, 0.0  ;;  %v454_v49 = vadd.f32 %v453_v46, %v293_v36 }
 0x109   : > { %v462_v52 = vmax.f32 %v452_v44, 0.0  ;;  %v461_v53 = vmax.f32 %v377_v45, 0.0 }
 0x10a   : > { %v946_v55 = vpack.c.bf16 %v460_v48, %v456_v47  ;;  %v463_v56 = vmax.f32 %v454_v49, 0.0 }
 0x10b   : > { %v950_v57 = vpack.c.bf16 %v462_v52, %v458_v50  ;;  %v944_v58 = vpack.c.bf16 %v461_v53, %v457_v51 }
 0x10c   : > { %v948_v59 = vpack.c.bf16 %v463_v56, %v459_v54 }
 0x10d   : > { %945 = vmatprep.subr.bf16.mxu0 %v944_v58 }
 0x10e   : > { %949 = vmatprep.subr.bf16.mxu1 %v948_v59  ;;  %947 = vmatpush1.bf16.msra.mxu0 %v946_v55 }
 0x10f   : > { %951 = vmatpush1.bf16.msra.mxu1 %v950_v57 }
 0x111   : > { %922 = vmatmul.mubr.msk.f32.vlgmr.msra.gmra.mrb[4].mxu0 %vm295_vm0, %v464_v60 }
 0x112   : > { %926 = vmatmul.mubr.msk.f32.vlgmr.msra.gmra.mrb[4].mxu1 %vm295_vm0, %v464_v60  ;;  %574 = vmatprep.mubr.f32.mxu0 %v1076_v8 }
 0x113   : > { %663 = vmatprep.mubr.f32.mxu1 %v1076_v8 }
 0x115   : > { %923 = vmatmul.mubr.msk.f32.gmra.mrb[6].mxu0 %vm295_vm0, %v465_v61 }
 0x116   : > { %927 = vmatmul.mubr.msk.f32.gmra.mrb[6].mxu1 %vm295_vm0, %v465_v61  ;;  %580 = vmatprep.mubr.f32.mxu0 %v1076_v8 }
 0x117   : > { %669 = vmatprep.mubr.f32.mxu1 %v1076_v8 }
 0x119   : > { %924 = vmatmul.mubr.msk.f32.gmra.mrb[8].mxu0 %vm295_vm0, %v466_v62 }
 0x11a   : > { %928 = vmatmul.mubr.msk.f32.gmra.mrb[8].mxu1 %vm295_vm0, %v466_v62  ;;  %586 = vmatprep.mubr.f32.mxu0 %v1076_v8 }
 0x11b   : > { %675 = vmatprep.mubr.f32.mxu1 %v1076_v8 }
 0x11d   : > { %925 = vmatmul.mubr.msk.f32.gmra.mrb[10].mxu0 %vm295_vm0, %v467_v63 }
 0x11e   : > { %929 = vmatmul.mubr.msk.f32.gmra.mrb[10].mxu1 %vm295_vm0, %v467_v63 }
 0x1e4   : > { %v570_v1 = vpop.f32.mrb[4].mxu0 }
 0x1e5   : > { %v659_v2 = vpop.f32.mrb[4].mxu1  ;;  %v572_v3 = vpop.f32.mrb[5].mxu0  ;;  %v1238_v5 = vadd.f32 %v570_v1, %v475_v0 }
 0x1e6   : > { %v661_v4 = vpop.f32.mrb[5].mxu1  ;;  %v1240_v6 = vadd.f32 %v659_v2, %v475_v0  ;;  %v1242_v7 = vadd.f32 %v572_v3, %v475_v0 }
 0x1e7   : > { %v1244_v11 = vadd.f32 %v661_v4, %v475_v0  ;;  %v682_v17 = vmul.f32 %v1238_v5, %v1238_v5 }
 0x1e8   : > { %v576_v9 = vpop.f32.mrb[6].mxu0  ;;  %v684_v21 = vmul.f32 %v1240_v6, %v1240_v6  ;;  %v683_v22 = vmul.f32 %v1242_v7, %v1242_v7 }
 0x1e9   : > { %v665_v8 = vpop.f32.mrb[6].mxu1  ;;  %v1246_v12 = vadd.f32 %v576_v9, %v480_v10  ;;  %v578_v13 = vpop.f32.mrb[7].mxu0  ;;  %v685_v26 = vmul.f32 %v1244_v11, %v1244_v11 }
 0x1ea   : > { %v1248_v14 = vadd.f32 %v665_v8, %v480_v10  ;;  %v1250_v15 = vadd.f32 %v578_v13, %v480_v10  ;;  %v667_v16 = vpop.f32.mrb[7].mxu1 }
 0x1eb   : > { %v686_v18 = vmul.f32 %v1246_v12, %v1246_v12  ;;  %v1256_v19 = vadd.f32 %v667_v16, %v480_v10 }
 0x1ec   : > { %v688_v23 = vmul.f32 %v1248_v14, %v1248_v14  ;;  %v687_v24 = vmul.f32 %v1250_v15, %v1250_v15  ;;  %v582_v25 = vpop.f32.mrb[8].mxu0 }
 0x1ed   : > { %v689_v27 = vmul.f32 %v1256_v19, %v1256_v19  ;;  %v1270_v28 = vadd.f32 %v582_v25, %v485_v20  ;;  %v698_v29 = vadd.f32 %v686_v18, %v682_v17  ;;  %v671_v30 = vpop.f32.mrb[8].mxu1  ;;  %v584_v31 = vpop.f32.mrb[9].mxu0 }
 0x1ee   : > { %v707_v32 = vadd.f32 %v687_v24, %v683_v22  ;;  %v1272_v33 = vadd.f32 %v671_v30, %v485_v20  ;;  %v716_v34 = vadd.f32 %v688_v23, %v684_v21  ;;  %v1274_v35 = vadd.f32 %v584_v31, %v485_v20  ;;  %v673_v36 = vpop.f32.mrb[9].mxu1 }
 0x1ef   : > { %v725_v37 = vadd.f32 %v689_v27, %v685_v26  ;;  %v690_v38 = vmul.f32 %v1270_v28, %v1270_v28  ;;  %v1278_v39 = vadd.f32 %v673_v36, %v485_v20 }
 0x1f0   : > { %v692_v40 = vmul.f32 %v1272_v33, %v1272_v33  ;;  %v691_v41 = vmul.f32 %v1274_v35, %v1274_v35  ;;  %v588_v43 = vpop.f32.mrb[10].mxu0 }
 0x1f1   : > { %v699_v44 = vadd.f32 %v698_v29, %v690_v38  ;;  %v693_v45 = vmul.f32 %v1278_v39, %v1278_v39  ;;  %v589_v46 = vadd.f32 %v588_v43, %v490_v42  ;;  %v677_v47 = vpop.f32.mrb[10].mxu1  ;;  %v590_v48 = vpop.f32.mrb[11].mxu0 }
 0x1f2   : > { %v717_v49 = vadd.f32 %v716_v34, %v692_v40  ;;  %v708_v50 = vadd.f32 %v707_v32, %v691_v41  ;;  %v678_v51 = vadd.f32 %v677_v47, %v490_v42  ;;  %v1286_v52 = vadd.f32 %v590_v48, %v490_v42  ;;  %v679_v53 = vpop.f32.mrb[11].mxu1 }
 0x1f3   : > { %v726_v54 = vadd.f32 %v725_v37, %v693_v45  ;;  %v694_v55 = vmul.f32 %v589_v46, %v589_v46  ;;  %v1288_v56 = vadd.f32 %v679_v53, %v490_v42 }
 0x1f4   : > { %v696_v57 = vmul.f32 %v678_v51, %v678_v51  ;;  %v695_v58 = vmul.f32 %v1286_v52, %v1286_v52 }
 0x1f5   : > { %v700_v59 = vadd.f32 %v699_v44, %v694_v55  ;;  %v697_v60 = vmul.f32 %v1288_v56, %v1288_v56 }
 0x1f6   : > { %v718_v61 = vadd.f32 %v717_v49, %v696_v57  ;;  %v709_v62 = vadd.f32 %v708_v50, %v695_v58 }
 0x1f7   : > { %v701_v63 = vrot.slane %v700_v59, 4  ;;  %v727_v0 = vadd.f32 %v726_v54, %v697_v60 }
 0x1f8   : > { %v719_v1 = vrot.slane %v718_v61, 4  ;;  %v710_v2 = vrot.slane %v709_v62, 4 }
 0x1f9   : > { %v702_v3 = vadd.f32 %v701_v63, %v700_v59  ;;  %v728_v4 = vrot.slane %v727_v0, 4 }
 0x1fa   : > { %v720_v9 = vadd.f32 %v719_v1, %v718_v61  ;;  %v711_v10 = vadd.f32 %v710_v2, %v709_v62 }
 0x1fb   : > { %v703_v8 = vrot.slane %v702_v3, 2  ;;  %v729_v13 = vadd.f32 %v728_v4, %v727_v0 }
 0x1fc   : > { %v721_v16 = vrot.slane %v720_v9, 2  ;;  %v712_v17 = vrot.slane %v711_v10, 2 }
 0x1fd   : > { %v704_v18 = vadd.f32 %v703_v8, %v702_v3  ;;  %v730_v20 = vrot.slane %v729_v13, 2 }
 0x1fe   : > { %v722_v21 = vadd.f32 %v721_v16, %v720_v9  ;;  %v713_v22 = vadd.f32 %v712_v17, %v711_v10 }
 0x1ff   : > { %v705_v23 = vrot.slane %v704_v18, 1  ;;  %v731_v24 = vadd.f32 %v730_v20, %v729_v13 }
 0x200   : > { %v723_v25 = vrot.slane %v722_v21, 1  ;;  %v714_v26 = vrot.slane %v713_v22, 1 }
 0x201   : > { %v706_v27 = vadd.f32 %v705_v23, %v704_v18  ;;  %v732_v29 = vrot.slane %v731_v24, 1 }
 0x202   : > { %v724_v30 = vadd.f32 %v723_v25, %v722_v21  ;;  %v715_v31 = vadd.f32 %v714_v26, %v713_v22 }
 0x203   : > { %v734_v32 = vmax.f32 %v706_v27, 1e-24  ;;  %v733_v34 = vadd.f32 %v732_v29, %v731_v24 }
 0x204   : > { %v736_v36 = vmax.f32 %v724_v30, 1e-24  ;;  %v735_v37 = vmax.f32 %v715_v31, 1e-24 }
 0x205   : > { %1012 = vrsqrt.f32 %v734_v32  ;;  %v737_v38 = vmax.f32 %v733_v34, 1e-24 }
 0x206   : > { %1014 = vrsqrt.f32 %v736_v36 }
 0x207   : > { %1016 = vrsqrt.f32 %v735_v37 }
 0x208   : > { %1018 = vrsqrt.f32 %v737_v38 }
 0x20f   : > { %v1013_v40 = vpop.eup %1012 }
 0x210   : > { %v1015_v41 = vpop.eup %1014  ;;  %v742_v42 = vmul.f32 %v1013_v40, %v1238_v5  ;;  %v746_v43 = vmul.f32 %v1013_v40, %v1246_v12  ;;  %v750_v44 = vmul.f32 %v1013_v40, %v1270_v28  ;;  %v754_v45 = vmul.f32 %v1013_v40, %v589_v46 }
 0x211   : > { %v1017_v47 = vpop.eup %1016  ;;  %v744_v48 = vmul.f32 %v1015_v41, %v1240_v6  ;;  %v748_v49 = vmul.f32 %v1015_v41, %v1248_v14  ;;  %v752_v50 = vmul.f32 %v1015_v41, %v1272_v33  ;;  %v756_v53 = vmul.f32 %v1015_v41, %v678_v51 }
 0x212   : > { %v1019_v54 = vpop.eup %1018  ;;  %758 = vst [vmem:[%s1302_s18] sm:$0xff] %v742_v42  ;;  %762 = vst [vmem:[%s1302_s18 + $0x20] sm:$0xff] %v746_v43  ;;  %v743_v5 = vmul.f32 %v1017_v47, %v1242_v7  ;;  %v747_v6 = vmul.f32 %v1017_v47, %v1250_v15  ;;  %v751_v12 = vmul.f32 %v1017_v47, %v1274_v35 }
 0x213   : > { %766 = vst [vmem:[%s1302_s18 + $0x40] sm:$0xff] %v750_v44  ;;  %770 = vst [vmem:[%s1302_s18 + $0x60] sm:$0xff] %v754_v45  ;;  %v755_v14 = vmul.f32 %v1017_v47, %v1286_v52  ;;  %v745_v28 = vmul.f32 %v1019_v54, %v1244_v11  ;;  %v749_v33 = vmul.f32 %v1019_v54, %v1256_v19  ;;  %780 = sbr.rel (!%p1156_p6) target bundleno = 548 (0x224), region = 67 }
 0x214   : > { %760 = vst [vmem:[%s1302_s18 + $0x10] sm:$0xff] %v744_v48  ;;  %764 = vst [vmem:[%s1302_s18 + $0x30] sm:$0xff] %v748_v49  ;;  %v753_v7 = vmul.f32 %v1019_v54, %v1278_v39  ;;  %v757_v46 = vmul.f32 %v1019_v54, %v1288_v56 }
 0x215   : > { %768 = vst [vmem:[%s1302_s18 + $0x50] sm:$0xff] %v752_v50  ;;  %772 = vst [vmem:[%s1302_s18 + $0x70] sm:$0xff] %v756_v53 }
 0x216   : > { %759 = vst [vmem:[%s1302_s18 + $0x8] sm:$0xff] %v743_v5  ;;  %763 = vst [vmem:[%s1302_s18 + $0x28] sm:$0xff] %v747_v6 }
 0x217   : > { %767 = vst [vmem:[%s1302_s18 + $0x48] sm:$0xff] %v751_v12  ;;  %771 = vst [vmem:[%s1302_s18 + $0x68] sm:$0xff] %v755_v14 }
 0x218   : > { %761 = vst [vmem:[%s1302_s18 + $0x18] sm:$0xff] %v745_v28  ;;  %765 = vst [vmem:[%s1302_s18 + $0x38] sm:$0xff] %v749_v33 }
 0x219   : > { %769 = vst [vmem:[%s1302_s18 + $0x58] sm:$0xff] %v753_v7  ;;  %773 = vst [vmem:[%s1302_s18 + $0x78] sm:$0xff] %v757_v46  ;;  %v798_v11 = vld [vmem:[%s1302_s18] sm:$0xff] (%p1156_p6) }
 0x21a   : > { %v806_v39 = vld [vmem:[%s1302_s18 + $0x20] sm:$0xff]  ;;  %799 = vst [vmem:[%s785_s11] sm:$0xff] %v798_v11 }
 0x21b   : > { %v802_v19 = vld [vmem:[%s1302_s18 + $0x10] sm:$0xff]  ;;  %v814_v56 = vld [vmem:[%s1302_s18 + $0x40] sm:$0xff]  ;;  %807 = vst [vmem:[%s785_s11 + $0x40] sm:$0xff] %v806_v39 }
 0x21c   : > { %v810_v52 = vld [vmem:[%s1302_s18 + $0x30] sm:$0xff]  ;;  %803 = vst [vmem:[%s785_s11 + $0x10] sm:$0xff] %v802_v19  ;;  %815 = vst [vmem:[%s785_s11 + $0x80] sm:$0xff] %v814_v56  ;;  %v822_v60 = vld [vmem:[%s1302_s18 + $0x60] sm:$0xff] }
 0x21d   : > { %v800_v15 = vld [vmem:[%s1302_s18 + $0x8] sm:$0xff]  ;;  %v818_v58 = vld [vmem:[%s1302_s18 + $0x50] sm:$0xff]  ;;  %811 = vst [vmem:[%s785_s11 + $0x50] sm:$0xff] %v810_v52  ;;  %823 = vst [vmem:[%s785_s11 + $0xc0] sm:$0xff] %v822_v60 }
 0x21e   : > { %v808_v51 = vld [vmem:[%s1302_s18 + $0x28] sm:$0xff]  ;;  %801 = vst [vmem:[%s785_s11 + $0x8] sm:$0xff] %v800_v15  ;;  %819 = vst [vmem:[%s785_s11 + $0x90] sm:$0xff] %v818_v58  ;;  %v826_v62 = vld [vmem:[%s1302_s18 + $0x70] sm:$0xff] }
 0x21f   : > { %v804_v35 = vld [vmem:[%s1302_s18 + $0x18] sm:$0xff]  ;;  %v816_v57 = vld [vmem:[%s1302_s18 + $0x48] sm:$0xff]  ;;  %809 = vst [vmem:[%s785_s11 + $0x48] sm:$0xff] %v808_v51  ;;  %827 = vst [vmem:[%s785_s11 + $0xd0] sm:$0xff] %v826_v62 }
 0x220   : > { %v812_v55 = vld [vmem:[%s1302_s18 + $0x38] sm:$0xff]  ;;  %805 = vst [vmem:[%s785_s11 + $0x18] sm:$0xff] %v804_v35  ;;  %817 = vst [vmem:[%s785_s11 + $0x88] sm:$0xff] %v816_v57  ;;  %v824_v61 = vld [vmem:[%s1302_s18 + $0x68] sm:$0xff] }
 0x221   : > { %v820_v59 = vld [vmem:[%s1302_s18 + $0x58] sm:$0xff]  ;;  %813 = vst [vmem:[%s785_s11 + $0x58] sm:$0xff] %v812_v55  ;;  %825 = vst [vmem:[%s785_s11 + $0xc8] sm:$0xff] %v824_v61 }
 0x222   : > { %821 = vst [vmem:[%s785_s11 + $0x98] sm:$0xff] %v820_v59  ;;  %v828_v63 = vld [vmem:[%s1302_s18 + $0x78] sm:$0xff] }
 0x223   : > { %829 = vst [vmem:[%s785_s11 + $0xd8] sm:$0xff] %v828_v63 }
 0x224 PF: > { %s15_s24 = sadd.s32 1, %s1074_s24   ;;  %s1379_s18 = smov %s1054_s19 }
 0x225   : > { %p12_p12 = scmp.ge.s32.totalorder %s15_s24, 6   ;;  %s1380_s19 = smov %s1164_s8 }
 0x226   : > { %s1381_s20 = smov %s1066_s22  ;;  %s1382_s21 = smov %s1070_s23 }
 0x227   : > { %s1383_s22 = smov %s1386_s25  ;;  %s1384_s23 = smov %s1390_s26 }
 0x228   :  { %14 = sbr.rel (!%p12_p12) target bundleno = 4 (0x4), region = 121 }

</bundles_post_ra>
